<compile_context>
chip_gen: v7x
topology: tpu7x:2x2x1
jax: 0.10.0
libtpu: 0.0.40
codegen_flags: <defaults>
</compile_context>

<pallas_src>
import functools

import jax
import jax.numpy as jnp
from jax.experimental import pallas as pl
from jax.experimental.pallas import tpu as pltpu

# Small, forward-consistent sizes (synthetic; mirrors EMBEDDING_DIM / EMOTIONS_NUM).
VOCAB_SIZE = 100
EMBEDDING_DIM = 32
EMOTIONS_NUM = 8
BATCH = 12          # deliberately not a multiple of the tile -> exercises padding path
SEQ_LEN = 8

BATCH_TILE = 8      # rows per grid step (multiple of 8); use 128-256 at real batch sizes
C_PAD = 128         # lane-dense padded class dimension
V_PAD = 128         # lane-dense padded vocab dimension (matmul K)


def fasttext_kernel(ids_ref, ft_ref, b_ref, o_ref, *, seq_len: int, vocab_pad: int):
    """One batch tile.

    ids_ref : VMEM (tb, S) int32        -- token ids for this batch tile
    ft_ref  : VMEM (V_PAD, C_PAD) f32   -- fused table emb @ W^T, zero-padded
    b_ref   : VMEM (1, C_PAD) f32       -- fc bias, zero-padded
    o_ref   : VMEM (tb, C_PAD) f32      -- logits for this batch tile (lane-dense)
    """
    tb = ids_ref.shape[0]
    ids = ids_ref[...]                                            # (tb, S) int32

    # Token-count matrix counts[b, v] = #{s : ids[b, s] == v}, built with pure
    # VPU lane compares (no gather, no DMA).  S is small & static -> Python loop.
    iota_v = jax.lax.broadcasted_iota(jnp.int32, (tb, vocab_pad), 1)
    counts = jnp.zeros((tb, vocab_pad), jnp.float32)
    for s in range(seq_len):
        tok = ids[:, s:s + 1]                                     # (tb, 1)
        counts = counts + (tok == iota_v).astype(jnp.float32)

    # dropout: identity (eval mode).

    # mean-pool + linear, fused:  (1/S) * counts @ (emb @ W^T) + b
    logits = jnp.dot(counts, ft_ref[...], preferred_element_type=jnp.float32)
    o_ref[...] = logits * jnp.float32(1.0 / seq_len) + b_ref[...]


def prepare_params(emb_table, fc_w, fc_b, *, vocab_pad=V_PAD, c_pad=C_PAD):
    """One-time relayout + algebraic fusion (hoisted out of the forward path).

    Returns:
      fused_table (vocab_pad, c_pad) f32 = zero-padded emb_table @ fc_w.T
      b_pad       (1, c_pad) f32         = zero-padded bias
    Padded rows/cols are zero so they contribute nothing and padded logits are
    sliced off by the wrapper.  Only valid in eval mode (dropout == identity).
    """
    V, E = emb_table.shape
    C = fc_w.shape[0]
    assert V <= vocab_pad and C <= c_pad
    fused = jnp.matmul(
        emb_table.astype(jnp.float32),
        fc_w.astype(jnp.float32).T,
        precision=jax.lax.Precision.HIGHEST,
    )                                                             # (V, C)
    fused_table = jnp.zeros((vocab_pad, c_pad), jnp.float32).at[:V, :C].set(fused)
    b_pad = jnp.zeros((1, c_pad), jnp.float32).at[0, :C].set(fc_b.astype(jnp.float32))
    return fused_table, b_pad


def fasttext_forward(texts, fused_table, b_pad, num_classes, *, tb=BATCH_TILE):
    """texts: (B, S) int token ids; fused_table: (V_PAD, C_PAD); b_pad: (1, C_PAD)."""
    B, S = texts.shape
    vocab_pad, c_pad = fused_table.shape

    n_tiles = pl.cdiv(B, tb)
    bp = n_tiles * tb
    ids = texts.astype(jnp.int32)
    if bp != B:
        # Padded rows use token 0; their logits are computed but sliced off below.
        ids = jnp.pad(ids, ((0, bp - B), (0, 0)))

    kernel = functools.partial(fasttext_kernel, seq_len=S, vocab_pad=vocab_pad)

    out = pl.pallas_call(
        kernel,
        out_shape=jax.ShapeDtypeStruct((bp, c_pad), jnp.float32),
        grid_spec=pltpu.PrefetchScalarGridSpec(
            num_scalar_prefetch=0,
            grid=(n_tiles,),                                  # tile over batch
            in_specs=[
                pl.BlockSpec((tb, S), lambda i: (i, 0)),      # token ids
                pl.BlockSpec((vocab_pad, c_pad), lambda i: (0, 0)),  # fused table (resident)
                pl.BlockSpec((1, c_pad), lambda i: (0, 0)),   # bias (resident)
            ],
            out_specs=pl.BlockSpec((tb, c_pad), lambda i: (i, 0)),
        ),
        compiler_params=pltpu.CompilerParams(
            dimension_semantics=("parallel",),                # 2 TCs on v7x (even #tiles)
            vmem_limit_bytes=32 * 1024 * 1024,                # explicit budget, v7x-safe
        ),
    )(ids, fused_table, b_pad)

    return out[:B, :num_classes]


if __name__ == "__main__":
    key = jax.random.PRNGKey(0)
    k_emb, k_w, k_b, k_tok = jax.random.split(key, 4)

    # Deterministic synthetic parameters (shapes implied by the module __init__).
    emb_table = jax.random.normal(k_emb, (VOCAB_SIZE, EMBEDDING_DIM), jnp.float32)
    fc_w = jax.random.normal(k_w, (EMOTIONS_NUM, EMBEDDING_DIM), jnp.float32) * 0.1
    fc_b = jax.random.normal(k_b, (EMOTIONS_NUM,), jnp.float32) * 0.1

    # Example input: integer token ids, shape (B, S).
    texts = jax.random.randint(k_tok, (BATCH, SEQ_LEN), 0, VOCAB_SIZE, jnp.int32)

    # One-time parameter relayout + eval-mode algebraic fusion.
    fused_table, b_pad = prepare_params(emb_table, fc_w, fc_b)

    out = fasttext_forward(texts, fused_table, b_pad, EMOTIONS_NUM, tb=BATCH_TILE)
    out = jax.block_until_ready(out)

    # Pure-JAX reference check of the forward semantics (embedding -> mean -> fc).
    pooled = emb_table[texts].mean(axis=1)
    ref = jnp.matmul(pooled, fc_w.T, precision=jax.lax.Precision.HIGHEST) + fc_b
    assert out.shape == (BATCH, EMOTIONS_NUM)
    assert jnp.allclose(out, ref, atol=1e-4, rtol=1e-4)

    print("KERNEL_OK")
</pallas_src>

<mosaic_0001>
module attributes {stable_mosaic.version = 11 : i64} {
  func.func @fasttext_kernel(%arg0: i32, %arg1: memref<8x8xi32, #tpu.memory_space<vmem>>, %arg2: memref<128x128xf32, #tpu.memory_space<vmem>>, %arg3: memref<1x128xf32, #tpu.memory_space<vmem>>, %arg4: memref<8x128xf32, #tpu.memory_space<vmem>>) attributes {dimension_semantics = [#tpu.dimension_semantics<parallel>], iteration_bounds = array<i64: 2>, scalar_prefetch = 0 : i64, scratch_operands = 0 : i64, tpu.core_type = #tpu.core_type<tc>, window_params = [{transform_indices = @transform_0, window_bounds = array<i64: 8, 8>}, {pipeline_mode = #tpu.pipeline_mode<synchronous>, transform_indices = @transform_1, window_bounds = array<i64: 128, 128>}, {pipeline_mode = #tpu.pipeline_mode<synchronous>, transform_indices = @transform_2, window_bounds = array<i64: 1, 128>}, {transform_indices = @transform_3, window_bounds = array<i64: 8, 128>}]} {
    %c0 = arith.constant 0 : index
    %c0_0 = arith.constant 0 : index
    %0 = vector.load %arg1[%c0, %c0_0] : memref<8x8xi32, #tpu.memory_space<vmem>>, vector<8x8xi32>
    %1 = tpu.iota {dimensions = array<i32: 1>} : vector<8x128xi32>
    %cst = arith.constant 0.000000e+00 : f32
    %2 = vector.broadcast %cst : f32 to vector<8x128xf32>
    %3 = vector.extract_strided_slice %0 {offsets = [0, 0], sizes = [8, 1], strides = [1, 1]} : vector<8x8xi32> to vector<8x1xi32>
    %4 = vector.broadcast %3 : vector<8x1xi32> to vector<8x128xi32>
    %5 = arith.cmpi eq, %4, %1 : vector<8x128xi32>
    %6 = arith.extui %5 : vector<8x128xi1> to vector<8x128xi32>
    %7 = arith.sitofp %6 : vector<8x128xi32> to vector<8x128xf32>
    %8 = arith.addf %2, %7 : vector<8x128xf32>
    %9 = vector.extract_strided_slice %0 {offsets = [0, 1], sizes = [8, 1], strides = [1, 1]} : vector<8x8xi32> to vector<8x1xi32>
    %10 = vector.broadcast %9 : vector<8x1xi32> to vector<8x128xi32>
    %11 = arith.cmpi eq, %10, %1 : vector<8x128xi32>
    %12 = arith.extui %11 : vector<8x128xi1> to vector<8x128xi32>
    %13 = arith.sitofp %12 : vector<8x128xi32> to vector<8x128xf32>
    %14 = arith.addf %8, %13 : vector<8x128xf32>
    %15 = vector.extract_strided_slice %0 {offsets = [0, 2], sizes = [8, 1], strides = [1, 1]} : vector<8x8xi32> to vector<8x1xi32>
    %16 = vector.broadcast %15 : vector<8x1xi32> to vector<8x128xi32>
    %17 = arith.cmpi eq, %16, %1 : vector<8x128xi32>
    %18 = arith.extui %17 : vector<8x128xi1> to vector<8x128xi32>
    %19 = arith.sitofp %18 : vector<8x128xi32> to vector<8x128xf32>
    %20 = arith.addf %14, %19 : vector<8x128xf32>
    %21 = vector.extract_strided_slice %0 {offsets = [0, 3], sizes = [8, 1], strides = [1, 1]} : vector<8x8xi32> to vector<8x1xi32>
    %22 = vector.broadcast %21 : vector<8x1xi32> to vector<8x128xi32>
    %23 = arith.cmpi eq, %22, %1 : vector<8x128xi32>
    %24 = arith.extui %23 : vector<8x128xi1> to vector<8x128xi32>
    %25 = arith.sitofp %24 : vector<8x128xi32> to vector<8x128xf32>
    %26 = arith.addf %20, %25 : vector<8x128xf32>
    %27 = vector.extract_strided_slice %0 {offsets = [0, 4], sizes = [8, 1], strides = [1, 1]} : vector<8x8xi32> to vector<8x1xi32>
    %28 = vector.broadcast %27 : vector<8x1xi32> to vector<8x128xi32>
    %29 = arith.cmpi eq, %28, %1 : vector<8x128xi32>
    %30 = arith.extui %29 : vector<8x128xi1> to vector<8x128xi32>
    %31 = arith.sitofp %30 : vector<8x128xi32> to vector<8x128xf32>
    %32 = arith.addf %26, %31 : vector<8x128xf32>
    %33 = vector.extract_strided_slice %0 {offsets = [0, 5], sizes = [8, 1], strides = [1, 1]} : vector<8x8xi32> to vector<8x1xi32>
    %34 = vector.broadcast %33 : vector<8x1xi32> to vector<8x128xi32>
    %35 = arith.cmpi eq, %34, %1 : vector<8x128xi32>
    %36 = arith.extui %35 : vector<8x128xi1> to vector<8x128xi32>
    %37 = arith.sitofp %36 : vector<8x128xi32> to vector<8x128xf32>
    %38 = arith.addf %32, %37 : vector<8x128xf32>
    %39 = vector.extract_strided_slice %0 {offsets = [0, 6], sizes = [8, 1], strides = [1, 1]} : vector<8x8xi32> to vector<8x1xi32>
    %40 = vector.broadcast %39 : vector<8x1xi32> to vector<8x128xi32>
    %41 = arith.cmpi eq, %40, %1 : vector<8x128xi32>
    %42 = arith.extui %41 : vector<8x128xi1> to vector<8x128xi32>
    %43 = arith.sitofp %42 : vector<8x128xi32> to vector<8x128xf32>
    %44 = arith.addf %38, %43 : vector<8x128xf32>
    %45 = vector.extract_strided_slice %0 {offsets = [0, 7], sizes = [8, 1], strides = [1, 1]} : vector<8x8xi32> to vector<8x1xi32>
    %46 = vector.broadcast %45 : vector<8x1xi32> to vector<8x128xi32>
    %47 = arith.cmpi eq, %46, %1 : vector<8x128xi32>
    %48 = arith.extui %47 : vector<8x128xi1> to vector<8x128xi32>
    %49 = arith.sitofp %48 : vector<8x128xi32> to vector<8x128xf32>
    %50 = arith.addf %44, %49 : vector<8x128xf32>
    %c0_1 = arith.constant 0 : index
    %c0_2 = arith.constant 0 : index
    %51 = vector.load %arg2[%c0_1, %c0_2] : memref<128x128xf32, #tpu.memory_space<vmem>>, vector<128x128xf32>
    %cst_3 = arith.constant dense<0.000000e+00> : vector<8x128xf32>
    %52 = tpu.matmul %50, %51, %cst_3 {dimension_numbers = #tpu.dot_dimension_numbers<[1], [0], [0], [1], [0, 0, 1, 1], [], []>} : vector<8x128xf32>, vector<128x128xf32>, vector<8x128xf32> -> vector<8x128xf32>
    %cst_4 = arith.constant 1.250000e-01 : f32
    %53 = vector.broadcast %cst_4 : f32 to vector<8x128xf32>
    %54 = arith.mulf %52, %53 : vector<8x128xf32>
    %c0_5 = arith.constant 0 : index
    %c0_6 = arith.constant 0 : index
    %55 = vector.load %arg3[%c0_5, %c0_6] : memref<1x128xf32, #tpu.memory_space<vmem>>, vector<1x128xf32>
    %56 = vector.broadcast %55 : vector<1x128xf32> to vector<8x128xf32>
    %57 = arith.addf %54, %56 : vector<8x128xf32>
    %c0_7 = arith.constant 0 : index
    %c0_8 = arith.constant 0 : index
    %58 = vector.load %arg4[%c0_7, %c0_8] : memref<8x128xf32, #tpu.memory_space<vmem>>, vector<8x128xf32>
    tpu.vector_store %arg4[%c0_7, %c0_8], %57 {strides = array<i32>} : memref<8x128xf32, #tpu.memory_space<vmem>>, vector<8x128xf32>,
    return
  }
  func.func @transform_0(%arg0: i32) -> (i32, i32) {
    %c0_i32 = arith.constant 0 : i32
    %c0_i32_0 = arith.constant 0 : i32
    return %arg0, %c0_i32 : i32, i32
  }
  func.func @transform_1(%arg0: i32) -> (i32, i32) {
    %c0_i32 = arith.constant 0 : i32
    %c0_i32_0 = arith.constant 0 : i32
    %c0_i32_1 = arith.constant 0 : i32
    return %c0_i32, %c0_i32_0 : i32, i32
  }
  func.func @transform_2(%arg0: i32) -> (i32, i32) {
    %c0_i32 = arith.constant 0 : i32
    %c0_i32_0 = arith.constant 0 : i32
    %c0_i32_1 = arith.constant 0 : i32
    return %c0_i32, %c0_i32_0 : i32, i32
  }
  func.func @transform_3(%arg0: i32) -> (i32, i32) {
    %c0_i32 = arith.constant 0 : i32
    %c0_i32_0 = arith.constant 0 : i32
    return %arg0, %c0_i32 : i32, i32
  }
}

</mosaic_0001>

<bundles_post_ra>
// kernel: tpu_custom_call.1
= control target key start
LH: loop header
LB: loop body
LE: loop exit
PB: predicated region body
PF: predicated region fallthrough
CT: control target
= control target key end

     0   :  { %8 = vsyncpa [#allocation3], 0  ;;  %s867_s0 = inlined_call_operand.vmem [shape: s32[16,8], index: 0, kind: input, shape index: {}]   ;;  %s868_s1 = inlined_call_operand.hbm [shape: f32[128,128], index: 1, kind: input, shape index: {}]   ;;  %s869_s2 = inlined_call_operand.vmem [shape: f32[1,128], index: 2, kind: input, shape index: {}]   ;;  %s870_s3 = inlined_call_operand.hbm [shape: f32[16,128], index: 3, kind: output, shape index: {}]  }
   0x1   :  { %9 = vsyncpa [#allocation4], 0 }
   0x2   :  { %11 = vsyncpa [#allocation4 + $0x1], 0  ;;  %s721_s12 = smov 0   ;;  %s723_s13 = smov 0  }
   0x3   :  { %s725_s14 = smov 0   ;;  %s727_s15 = smov 0  }
   0x4 LB: > { %s742_s16 = sadd.s32 4294967295, %s684_s15   ;;  %s421_s17 = sadd.s32 4294967294, %s684_s15   ;;  %s684_s15 = sphi %s727_s15, %s886_s15   ;;  %s680_s14 = sphi %s725_s14, %s885_s14   ;;  %s676_s13 = sphi %s723_s13, %s884_s13   ;;  %s672_s12 = sphi %s721_s12, %s883_s12  }
   0x5   : > { %s746_s18 = sadd.s32 1, %s684_s15   ;;  %s92_s19 = sadd.s32 1, %s680_s14 }
   0x6   : > { %s89_s20 = ssub.s32 %s684_s15, %s746_s18  ;;  %p102_p0 = scmp.ne.s32.totalorder %s680_s14, %s676_s13 }
   0x7   : > { %p90_p1 = scmp.eq.s32.totalorder %s89_s20, 0  ;;  %p103_p2 = scmp.eq.s32.totalorder %s742_s16, 1 }
   0x8   : > { %p108_p3 = scmp.ne.s32.totalorder %s676_s13, %s672_s12  ;;  %p109_p4 = scmp.eq.s32.totalorder %s421_s17, 1 }
   0x9   : > { %s757_s21 = scalar_select %p90_p1, %s680_s14, %s92_s19  }
   0xa   : > { %p759_p5 = por %p103_p2, %p102_p0  ;;  %p763_p6 = por %p109_p4, %p108_p3 }
   0xb   : > { %p422_p7 = scmp.ge.s32.totalorder %s684_s15, 1  ;;  %p116_p8 = scmp.lt.s32.totalorder %s684_s15, 3 }
   0xc   : > { %s874_s22 = scalar_select %p759_p5, 1, 0 }
   0xd   : > { %s875_s23 = scalar_select %p763_p6, 1, 0 }
   0xe   : > { %p871_p9 = scmp.eq.s32.totalorder %s742_s16, 0  ;;  %p770_p10 = pnand %p422_p7, %p116_p8 }
   0xf   : > { %s686_s25 = smov [#allocation2]   ;;  %s590_s30 = scalar_lea.hbm %s868_s1, 2048 }
  0x10   : > { %s876_s24 = scalar_select %p770_p10, 1, 0 }
  0x11   : > { %s128_s26 = sshll.u32 %s686_s25, 4  ;;  %p524_p11 = pneg %p770_p10  ;;  %s129_s26 = int_to_ptr.vmem [resolvable:$true] %s128_s26 }
  0x12   : > { %p591_p13 = scmp.ne.s32.totalorder %s868_s1, %s590_s30  ;;  %p597_p3 = scmp.lt.u32.totalorder %s590_s30, %s868_s1 }
  0x13   : > { %p778_p12 = pnand %p871_p9, %p524_p11 }
  0x15   : > { %p592_p0 = pneg %p778_p12 }
  0x17   : > { %p593_p1 = pnand %p592_p0, %p591_p13 }
  0x19   : > { %p594_p2 = pneg %p593_p1 }
  0x1b   : > { %p599_p4 = pnand %p597_p3, %p594_p2 }
  0x1d   : > { %602 = shalt.err (!%p599_p4)
}
  0x1e   : > { %s603_s8 = scalar_lea.vmem %s129_s26, 2048  ;;  %p611_p9 = scmp.lt.s32.totalorder %s129_s26, %s129_s26 }
  0x1f   : > { %p604_p7 = scmp.ne.s32.totalorder %s129_s26, %s603_s8  ;;  %p612_p6 = scmp.lt.s32.totalorder %s603_s8, %s603_s8 }
  0x21   : > { %p606_p8 = pnand %p604_p7, %p592_p0  ;;  %p613_p5 = por %p612_p6, %p611_p9 }
  0x23   : > { %p607_p11 = pneg %p606_p8 }
  0x25   : > { %p614_p10 = pnand %p613_p5, %p607_p11 }
  0x27   : > { %617 = shalt.err (!%p614_p10)
}
  0x28   : > { %s687_s9 = smov 128   ;;  %s688_s10 = smov 8  }
  0x29   : > { %527 = dma.hbm_to_vmem [thread:$0]  (!%p778_p12), %s868_s1, 2048, %s129_s26, [#allocation3], %s687_s9, %s687_s9, %s688_s10  }
  0x2a   : > { %p878_p13 = scmp.ne.s32.totalorder %s876_s24, 0 }
  0x2b   : > { %p879_p1 = scmp.eq.s32.totalorder (!%p878_p13), %s742_s16, 0 }
  0x2c   : > { %154 = sbr.rel (%p878_p13) target bundleno = 441 (0x1b9), region = 32 }
  0x33   : > { %663 = dma.done.wait (%p879_p1), [#allocation3], 2048   ;;  %p880_p0 = pmov %p879_p1 }
  0x34   : > { %p177_p5 = scmp.lt.s32.totalorder %s742_s16, 1  ;;  %v689_v0 = vmov 2   ;;  %v690_v1 = vmov 0   ;;  %v691_v2 = vmov 0.0|0.0   ;;  %v240_v4 = vld [vmem:[#allocation2] sm:$0xff]  ;;  %v241_v5 = vld [vmem:[#allocation2 + $0x8] sm:$0xff]  ;;  %v182_v35 = vlaneseq }
  0x35   : > { %665 = vsyncadd (%p880_p0), [#allocation3], 4294965248  ;;  %583 = vset.pattern.permute.xlu1 %v689_v0  ;;  %581 = vset.pattern.permute.xlu0 %v690_v1  ;;  %v495_v6 = vpack.c.bf16 %v241_v5, %v240_v4  ;;  %v242_v7 = vld [vmem:[#allocation2 + $0x10] sm:$0xff]  ;;  %v243_v8 = vld [vmem:[#allocation2 + $0x18] sm:$0xff]  ;;  %v692_v10 = vmov 3   ;;  %v693_v11 = vmov 1  }
  0x36   : > { %s178_s19 = scalar_select %p177_p5, %s742_s16, 1  ;;  %494 = vmatprep.subr.bf16.mxu0 %v691_v2  ;;  %v498_v9 = vpack.c.bf16 %v243_v8, %v242_v7  ;;  %v244_v12 = vld [vmem:[#allocation2 + $0x20] sm:$0xff]  ;;  %v245_v13 = vld [vmem:[#allocation2 + $0x28] sm:$0xff]  ;;  %v246_v15 = vld [vmem:[#allocation2 + $0x30] sm:$0xff]  ;;  %v694_v17 = vmov 4   ;;  %v695_v18 = vmov 5  }
  0x37   : > { %496 = vmatpush3.bf16.msra.mxu0 %v495_v6  ;;  %v501_v14 = vpack.c.bf16 %v245_v13, %v244_v12  ;;  %v247_v16 = vld [vmem:[#allocation2 + $0x38] sm:$0xff]  ;;  %v248_v20 = vld [vmem:[#allocation2 + $0x40] sm:$0xff]  ;;  %v249_v21 = vld [vmem:[#allocation2 + $0x48] sm:$0xff]  ;;  %v696_v22 = vmov 6   ;;  %v697_v23 = vmov 7   ;;  %vm698_vm0 = vmmov 0  }
  0x38   : > { %s428_s20 = sshll.u32 %s178_s19, 3  ;;  %497 = vmatprep.subr.bf16.mxu0 %v691_v2  ;;  %v504_v19 = vpack.c.bf16 %v247_v16, %v246_v15  ;;  %v507_v24 = vpack.c.bf16 %v249_v21, %v248_v20  ;;  %v250_v25 = vld [vmem:[#allocation2 + $0x50] sm:$0xff]  ;;  %v251_v26 = vld [vmem:[#allocation2 + $0x58] sm:$0xff]  ;;  %v252_v28 = vld [vmem:[#allocation2 + $0x60] sm:$0xff]  ;;  %v699_v31 = vmov 0.0   ;;  %v183_v38 = vand.u32 127, %v182_v35 }
  0x39   : > { %s180_s26 = scalar_lea.vmem %s867_s0, %s428_s20  ;;  %v510_v27 = vpack.c.bf16 %v251_v26, %v250_v25  ;;  %v253_v29 = vld [vmem:[#allocation2 + $0x68] sm:$0xff]  ;;  %491 = vmatprep.mubr.msk.f32.mxu0 %vm698_vm0, %v699_v31  ;;  %v254_v32 = vld [vmem:[#allocation2 + $0x70] sm:$0xff]  ;;  %v255_v33 = vld [vmem:[#allocation2 + $0x78] sm:$0xff]  ;;  %s174_s27 = sand.u32 1, %s676_s13  }
  0x3a   : > { %v181_v3 = vld [vmem:[%s180_s26] sm:$0xff]  ;;  %v513_v30 = vpack.c.bf16 %v253_v29, %v252_v28  ;;  %v516_v34 = vpack.c.bf16 %v255_v33, %v254_v32  ;;  %s427_s28 = sshll.u32 %s174_s27, 3  ;;  %s439_s4 = sshll.u32 %s742_s16, 7 }
  0x3b   : > { %199 = vperm.xlu1 %583, %v181_v3   ;;  %185 = vperm.xlu0 %581, %v181_v3   ;;  %v437_v61 = vld [vmem:[%s869_s2] ss:$0 sm:$0xff]  ;;  %s176_s5 = scalar_lea.vmem [#allocation5], %s427_s28  ;;  %s825_s9 = scalar_lea.hbm %s870_s3, %s439_s4 }
  0x3c   : > { %499 = vmatpush3.bf16.msra.mxu0 %v498_v9  ;;  %s350_s6 = sshll.u32 %s176_s5, 4  ;;  %s337_s10 = scalar_lea.sflag [#allocation4], %s174_s27  ;;  %s827_s6 = int_to_ptr.vmem [resolvable:$true] %s350_s6 }
  0x3d   : > { %500 = vmatprep.subr.bf16.mxu0 %v691_v2  ;;  %s618_s11 = scalar_lea.vmem %s827_s6, 128  ;;  %p881_p9 = scmp.ne.s32.totalorder %s874_s22, 0 }
  0x3e   : > { %p619_p6 = scmp.ne.s32.totalorder %s827_s6, %s618_s11  ;;  %s700_s16 = smov [#allocation5]  }
  0x3f   : > { %584 = vset.pattern.permute.xlu1 %v692_v10  ;;  %582 = vset.pattern.permute.xlu0 %v693_v11  ;;  %s622_s17 = sshll.u32 %s700_s16, 4  ;;  %s623_s17 = int_to_ptr.vmem [resolvable:$false] %s622_s17 }
  0x40   : > { %206 = vperm.xlu1 %584, %v181_v3   ;;  %192 = vperm.xlu0 %582, %v181_v3   ;;  %p620_p10 = pnand %p619_p6, %p881_p9  ;;  %s624_s19 = scalar_lea.vmem %s623_s17, 256 }
  0x41   : > { %502 = vmatpush3.bf16.msra.mxu0 %v501_v14  ;;  %p625_p2 = scmp.lt.s32.totalorder %s827_s6, %s623_s17  ;;  %p626_p3 = scmp.lt.s32.totalorder %s624_s19, %s618_s11 }
  0x42   : > { %503 = vmatprep.subr.bf16.mxu0 %v691_v2  ;;  %p621_p12 = pneg %p620_p10 }
  0x43   : > { %p627_p4 = por %p626_p3, %p625_p2 }
  0x44   : > { %585 = vset.pattern.permute.xlu1 %v694_v17  ;;  %586 = vset.pattern.permute.xlu0 %v695_v18 }
  0x45   : > { %213 = vperm.xlu1 %585, %v181_v3   ;;  %220 = vperm.xlu0 %586, %v181_v3   ;;  %p628_p7 = pnand %p627_p4, %p621_p12 }
  0x46   : > { %505 = vmatpush3.bf16.msra.mxu0 %v504_v19 }
  0x47   : > { %506 = vmatprep.subr.bf16.mxu0 %v691_v2 }
  0x49   : > { %587 = vset.pattern.permute.xlu1 %v696_v22  ;;  %589 = vset.pattern.permute.xlu0 %v697_v23 }
  0x4a   : > { %227 = vperm.xlu1 %587, %v181_v3   ;;  %508 = vmatpush3.bf16.msra.mxu0 %v507_v24 }
  0x4b   : > { %509 = vmatprep.subr.bf16.mxu0 %v691_v2 }
  0x4e   : > { %588 = vset.pattern.permute.xlu1 %v697_v23  ;;  %511 = vmatpush3.bf16.msra.mxu0 %v510_v27 }
  0x4f   : > { %234 = vperm.xlu1 %588, %v181_v3   ;;  %512 = vmatprep.subr.bf16.mxu0 %v691_v2 }
  0x52   : > { %514 = vmatpush3.bf16.msra.mxu0 %v513_v30 }
  0x53   : > { %515 = vmatprep.subr.bf16.mxu0 %v691_v2 }
  0x56   : > { %517 = vmatpush3.bf16.msra.mxu0 %v516_v34 }
  0xba   : > { %v200_v36 = vpop.permute.xlu1 %199  ;;  %v186_v37 = vpop.permute.xlu0 %185 }
  0xbb   : > { %vm187_vm1 = vcmp.eq.s32.totalorder %v186_v37, %v183_v38  ;;  %vm201_vm2 = vcmp.eq.s32.totalorder %v200_v36, %v183_v38 }
  0xbc   : > { %v429_v41 = vsel %vm187_vm1, 1.0, %v699_v31  ;;  %v431_v44 = vsel %vm201_vm2, 1.0, %v699_v31 }
  0xbf   : > { %v207_v39 = vpop.permute.xlu1 %206  ;;  %v193_v40 = vpop.permute.xlu0 %192 }
  0xc0   : > { %vm194_vm3 = vcmp.eq.s32.totalorder %v193_v40, %v183_v38  ;;  %vm208_vm4 = vcmp.eq.s32.totalorder %v207_v39, %v183_v38 }
  0xc1   : > { %v430_v42 = vsel %vm194_vm3, 1.0, %v699_v31  ;;  %v432_v48 = vsel %vm208_vm4, 1.0, %v699_v31 }
  0xc2   : > { %v197_v43 = vadd.f32 %v430_v42, %v429_v41 }
  0xc4   : > { %v204_v45 = vadd.f32 %v431_v44, %v197_v43  ;;  %v214_v46 = vpop.permute.xlu1 %213  ;;  %v221_v47 = vpop.permute.xlu0 %220 }
  0xc5   : > { %vm215_vm5 = vcmp.eq.s32.totalorder %v214_v46, %v183_v38  ;;  %vm222_vm6 = vcmp.eq.s32.totalorder %v221_v47, %v183_v38 }
  0xc6   : > { %v211_v49 = vadd.f32 %v432_v48, %v204_v45  ;;  %v433_v50 = vsel %vm215_vm5, 1.0, %v699_v31  ;;  %v434_v52 = vsel %vm222_vm6, 1.0, %v699_v31 }
  0xc8   : > { %v218_v51 = vadd.f32 %v433_v50, %v211_v49 }
  0xc9   : > { %v228_v53 = vpop.permute.xlu1 %227 }
  0xca   : > { %vm229_vm7 = vcmp.eq.s32.totalorder %v228_v53, %v183_v38  ;;  %v225_v54 = vadd.f32 %v434_v52, %v218_v51 }
  0xcb   : > { %v435_v55 = vsel %vm229_vm7, 1.0, %v699_v31 }
  0xcc   : > { %v232_v57 = vadd.f32 %v435_v55, %v225_v54 }
  0xce   : > { %v235_v56 = vpop.permute.xlu1 %234 }
  0xcf   : > { %vm236_vm8 = vcmp.eq.s32.totalorder %v235_v56, %v183_v38 }
  0xd0   : > { %v436_v58 = vsel %vm236_vm8, 1.0, %v699_v31 }
  0xd1   : > { %v239_v59 = vadd.f32 %v436_v58, %v232_v57 }
  0xd3   : > { %492 = vmatmul.mubr.f32.vlgmr.msra.gmra.mrb[0].mxu0 %v239_v59 }
 0x1a6   : > { %v322_v60 = vpop.f32.mrb[0].mxu0 }
 0x1a7   : > { %v326_v62 = vmul.f32 0.125, %v322_v60  ;;  %v493_v63 = vpop.f32.mrb[1].mxu0 }
 0x1a9   : > { %v334_v0 = vadd.f32 %v437_v61, %v326_v62 }
 0x1ab   : > { %335 = vst [vmem:[%s176_s5] sm:$0xff] %v334_v0 }
 0x1ac   : > { %631 = shalt.err (!%p628_p7)
}
 0x1ad   : > { %s632_s20 = scalar_lea.hbm %s825_s9, 128  ;;  %s636_s26 = scalar_lea.hbm %s870_s3, 256 }
 0x1ae   : > { %p633_p8 = scmp.ne.s32.totalorder %s825_s9, %s632_s20  ;;  %p637_p1 = scmp.lt.u32.totalorder %s825_s9, %s870_s3 }
 0x1af   : > { %p638_p0 = scmp.lt.u32.totalorder %s636_s26, %s632_s20  ;;  %p640_p6 = scmp.lt.u32.totalorder %s632_s20, %s825_s9 }
 0x1b0   : > { %p634_p11 = pnand %p633_p8, %p881_p9 }
 0x1b1   : > { %p639_p5 = por %p638_p0, %p637_p1 }
 0x1b2   : > { %p635_p13 = pneg %p634_p11 }
 0x1b3   : > { %p641_p10 = por %p640_p6, %p639_p5 }
 0x1b5   : > { %p642_p12 = pnand %p641_p10, %p635_p13 }
 0x1b7   : > { %645 = shalt.err (!%p642_p12)
}
 0x1b8   : > { %522 = dma.vmem_to_hbm [thread:$0]  (%p881_p9), %s827_s6, 128, %s825_s9, %s337_s10  }
 0x1b9 PF: > { %p534_p2 = scmp.ge.s32.totalorder %s684_s15, 2  ;;  %s362_s29 = sand.u32 1, %s672_s12  }
 0x1ba   : > { %p882_p3 = scmp.ne.s32.totalorder %s875_s23, 0  ;;  %s363_s30 = scalar_lea.sflag [#allocation4], %s362_s29 }
 0x1bc   : > { %p529_p4 = pnand %p534_p2, %p882_p3 }
 0x1be   : > { %667 = dma.done.wait (!%p529_p4), %s363_s30, 128  }
 0x1bf   : > { %669 = vsyncadd (!%p529_p4), %s363_s30, 4294967168  ;;  %p14_p7 = scmp.ge.s32.totalorder %s746_s18, 4   ;;  %s883_s12 = smov %s676_s13 }
 0x1c0   : > { %s884_s13 = smov %s680_s14  ;;  %s885_s14 = smov %s757_s21 }
 0x1c1   : > { %s886_s15 = smov %s746_s18  ;;  %16 = sbr.rel (!%p14_p7) target bundleno = 4 (0x4), region = 72 }
 0x1c8   :  { %368 = vsyncpa [#allocation3], 1 }
 0x1c9   :  { %370 = vsyncpa [#allocation3 + $0x1], 1 }
 0x1ca   :  { %371 = vsyncpa [#allocation4], 1 }
 0x1cb   :  { %373 = vsyncpa [#allocation4 + $0x1], 1 }

</bundles_post_ra>
